<compile_context>
chip_gen: v7x
topology: tpu7x:2x2x1
jax: 0.10.0
libtpu: 0.0.40
codegen_flags: <defaults>
</compile_context>

<pallas_src>
import functools

import jax
import jax.numpy as jnp
from jax.experimental import pallas as pl
from jax.experimental.pallas import tpu as pltpu


def _round_up(x, m):
    return (x + m - 1) // m * m


def sample_patches(image, patch_size, stride, exclude_center):
    """Trace-time patch sampling; mirrors the PyTorch python loops exactly."""
    h, w = int(image.shape[2]), int(image.shape[3])
    patches = []
    for i in range(0, h - patch_size + 1, stride):
        for j in range(0, w - patch_size + 1, stride):
            if exclude_center:
                cx = i + patch_size / 2
                cy = j + patch_size / 2
                inside = (cx > h / 4) and (cx < h * 3 / 4) and \
                         (cy > w / 4) and (cy < w * 3 / 4)
                if inside:
                    continue
            patches.append(image[:, :, i:i + patch_size, j:j + patch_size])
    return jnp.concatenate(patches, axis=0)  # (N, C, P, P)


# ----------------------------- Tile-size heuristics -----------------------------

def _pick_k_tile(k, cap):
    """Multiple of 128 <= cap minimizing K padding; prefer larger tile on ties."""
    base = _round_up(max(int(k), 1), 128)
    cap = max(128, min(int(cap), base))
    best_t, best_pad = 128, _round_up(k, 128)
    for t in range(128, cap + 1, 128):
        pad = _round_up(k, t)
        if pad < best_pad or (pad == best_pad and t > best_t):
            best_t, best_pad = t, pad
    return best_t


def _pick_style_tile(ns, cap, tm_cap):
    """Style-axis tile (multiple of 128) minimizing  ni*Np + nj*Mp  DMA proxy."""
    base = _round_up(max(int(ns), 1), 128)
    cap = max(128, min(int(cap), base))
    m_proxy = base                                   # Nc is usually ~ Ns
    ni_proxy = -(-m_proxy // max(int(tm_cap), 8))
    best_t, best_cost = 128, None
    for t in range(128, cap + 1, 128):
        np_pad = _round_up(ns, t)
        cost = ni_proxy * np_pad + (np_pad // t) * m_proxy
        if best_cost is None or cost < best_cost or (cost == best_cost and t > best_t):
            best_t, best_cost = t, cost
    return best_t


def _pick_m_tile(nc, cap, np_pad, nj):
    """Synth-axis tile (multiple of 8) minimizing  ni*Np (T refetch) + nj*Mp (S)."""
    base = _round_up(max(int(nc), 1), 8)
    cap = max(8, min(int(cap), base))
    best_t, best_cost = 8, None
    for t in range(8, cap + 1, 8):
        mp = _round_up(nc, t)
        ni = mp // t
        cost = ni * np_pad + nj * mp
        if best_cost is None or cost < best_cost or (cost == best_cost and t > best_t):
            best_t, best_cost = t, cost
    return best_t


# ----------------------------- Fused Pallas kernel -----------------------------

def _mrf_kernel(s_ref, t_ref, invn_ref, tn2_ref,      # inputs
                sse_ref, idx_ref,                      # outputs
                acc_sc, m_sc, pay_sc, idx_sc, s2_sc,   # scratch
                *, ns_total, tn):
    """Grid = (i over synth tiles [parallel], j over style tiles, k over K tiles).

    acc_sc : (tm, tn) f32  running K-accumulated dot products for the current j
    m_sc   : (tm, 1)  f32  running max normalized score across j
    pay_sc : (tm, 1)  f32  running (||T_best||^2 - 2*<S, T_best>)
    idx_sc : (tm, 1)  i32  running argmax style index
    s2_sc  : (tm, 1)  f32  ||S_row||^2 (accumulated over k at j == 0)
    """
    j = pl.program_id(1)
    k = pl.program_id(2)
    nj = pl.num_programs(1)
    nk = pl.num_programs(2)

    @pl.when(jnp.logical_and(j == 0, k == 0))
    def _():
        m_sc[...] = jnp.full(m_sc.shape, -jnp.inf, m_sc.dtype)
        pay_sc[...] = jnp.zeros_like(pay_sc)
        idx_sc[...] = jnp.zeros_like(idx_sc)
        s2_sc[...] = jnp.zeros_like(s2_sc)

    @pl.when(k == 0)
    def _():
        acc_sc[...] = jnp.zeros_like(acc_sc)

    # ||S_row||^2, accumulated over K tiles only on the first style tile.
    @pl.when(j == 0)
    def _():
        s = s_ref[...].astype(jnp.float32)
        s2_sc[...] += jnp.sum(s * s, axis=1, keepdims=True)

    # MXU: (tm, tk) x (tn, tk)^T -> (tm, tn), f32 accumulate.
    acc_sc[...] += jax.lax.dot_general(
        s_ref[...], t_ref[...],
        dimension_numbers=(((1,), (1,)), ((), ())),
        preferred_element_type=jnp.float32)

    # After the full K reduction for this style tile: update the running argmax.
    @pl.when(k == nk - 1)
    def _():
        dot = acc_sc[...]                              # (tm, tn) f32
        score = dot * invn_ref[...]                    # normalized response
        col = jax.lax.broadcasted_iota(jnp.int32, dot.shape, 1) + j * tn
        score = jnp.where(col < ns_total, score, -jnp.inf)   # mask padded columns

        blk_max = jnp.max(score, axis=1, keepdims=True)      # (tm, 1)
        colf = col.astype(jnp.float32)                        # exact for col < 2^24
        cand = jnp.where(score == blk_max, colf, jnp.float32(2 ** 30))
        blk_argf = jnp.min(cand, axis=1, keepdims=True)       # first max -> argmax ties
        sel = colf == blk_argf                                 # one-hot per row

        payload = tn2_ref[...] - 2.0 * dot                     # ||T||^2 - 2<S,T>
        blk_pay = jnp.sum(jnp.where(sel, payload, 0.0), axis=1, keepdims=True)

        better = blk_max > m_sc[...]                           # strict > keeps first tie
        m_sc[...] = jnp.where(better, blk_max, m_sc[...])
        pay_sc[...] = jnp.where(better, blk_pay, pay_sc[...])
        idx_sc[...] = jnp.where(better, blk_argf.astype(jnp.int32), idx_sc[...])

    @pl.when(jnp.logical_and(j == nj - 1, k == nk - 1))
    def _():
        sse_ref[...] = s2_sc[...] + pay_sc[...]
        idx_ref[...] = idx_sc[...]


def _mrf_best_match(Sp, Tp, invnp, tn2p, *, ns_total, tm, tn, tk):
    """Returns (sse, best_idx) of shapes (Mp, 1) f32 / (Mp, 1) i32."""
    Mp, Kp = Sp.shape
    Np = Tp.shape[0]
    grid = (Mp // tm, Np // tn, Kp // tk)
    kernel = functools.partial(_mrf_kernel, ns_total=ns_total, tn=tn)

    return pl.pallas_call(
        kernel,
        out_shape=(jax.ShapeDtypeStruct((Mp, 1), jnp.float32),
                   jax.ShapeDtypeStruct((Mp, 1), jnp.int32)),
        grid_spec=pltpu.PrefetchScalarGridSpec(
            num_scalar_prefetch=0,
            grid=grid,
            in_specs=[
                pl.BlockSpec((tm, tk), lambda i, j, k: (i, k)),
                # If the T-tile DMA is ever exposed, add pipeline_mode=pl.Buffered(3).
                pl.BlockSpec((tn, tk), lambda i, j, k: (j, k)),
                pl.BlockSpec((1, tn), lambda i, j, k: (0, j)),
                pl.BlockSpec((1, tn), lambda i, j, k: (0, j)),
            ],
            out_specs=[
                pl.BlockSpec((tm, 1), lambda i, j, k: (i, 0)),
                pl.BlockSpec((tm, 1), lambda i, j, k: (i, 0)),
            ],
            scratch_shapes=[
                pltpu.VMEM((tm, tn), jnp.float32),   # acc_sc
                pltpu.VMEM((tm, 1), jnp.float32),    # m_sc
                pltpu.VMEM((tm, 1), jnp.float32),    # pay_sc
                pltpu.VMEM((tm, 1), jnp.int32),      # idx_sc
                pltpu.VMEM((tm, 1), jnp.float32),    # s2_sc
            ],
        ),
        compiler_params=pltpu.CompilerParams(
            dimension_semantics=("parallel", "arbitrary", "arbitrary")),
    )(Sp, Tp, invnp, tn2p)


# ----------------------------- Module wrapper -----------------------------

class StyleLossPallas:
    """Pallas TPU port of the PyTorch MRF StyleLoss module (forward semantics)."""

    def __init__(self, target, patch_size, mrf_style_stride, mrf_synthesis_stride,
                 gpu_chunck_size=256, compute_dtype=jnp.bfloat16,
                 tm=256, tn=512, tk=1024):
        self.patch_size = patch_size
        self.mrf_style_stride = mrf_style_stride
        self.mrf_synthesis_stride = mrf_synthesis_stride
        # gpu_chunck_size only bounds GPU memory in the PyTorch code; the Pallas
        # kernel tiles via BlockSpec instead, so it is unused here.
        self.gpu_chunck_size = gpu_chunck_size
        self.compute_dtype = compute_dtype
        self.tm, self.tn, self.tk = tm, tn, tk
        self.loss = None
        self.best_idx = None
        self.update(target)

    def update(self, target):
        self.style_patches = sample_patches(
            jax.lax.stop_gradient(target), self.patch_size,
            self.mrf_style_stride, exclude_center=True)            # (Ns, C, P, P)
        Ns = int(self.style_patches.shape[0])
        K = int(self.style_patches.shape[1] * self.style_patches.shape[2]
                * self.style_patches.shape[3])
        T = self.style_patches.reshape(Ns, K).astype(jnp.float32)

        # Static per-target quantities, computed once in f32.
        tnorm2 = jnp.sum(T * T, axis=1)          # ||T_n||^2
        invnorm = 1.0 / jnp.sqrt(tnorm2)         # 1 / ||T_n||  (multiply in-kernel)

        # Pick tiles, then build the padded/cast style-side buffers ONCE.
        self._Ns, self._K = Ns, K
        self._tk_eff = _pick_k_tile(K, self.tk)
        self._tn_eff = _pick_style_tile(Ns, self.tn, self.tm)
        self._Np = _round_up(Ns, self._tn_eff)
        self._Kp = _round_up(K, self._tk_eff)
        self._Tp = jnp.zeros((self._Np, self._Kp), self.compute_dtype)
        self._Tp = self._Tp.at[:Ns, :K].set(T.astype(self.compute_dtype))
        self._invnp = jnp.zeros((1, self._Np), jnp.float32).at[0, :Ns].set(invnorm)
        self._tn2p = jnp.zeros((1, self._Np), jnp.float32).at[0, :Ns].set(tnorm2)

        # Jit the whole forward (patch sampling + pad + fused kernel + loss); this
        # compiles once per input shape and avoids eager per-slice dispatch.
        self._forward_jit = jax.jit(self._forward_impl)

    def _forward_impl(self, x):
        synth = sample_patches(x, self.patch_size, self.mrf_synthesis_stride,
                               exclude_center=False)               # (Nc, C, P, P)
        Nc = int(synth.shape[0])
        K = int(synth.shape[1] * synth.shape[2] * synth.shape[3])
        assert K == self._K, "input feature size must match the style target"
        S = synth.reshape(Nc, K)

        nj = self._Np // self._tn_eff
        tm_eff = _pick_m_tile(Nc, self.tm, self._Np, nj)
        Mp = _round_up(Nc, tm_eff)
        Sp = jnp.zeros((Mp, self._Kp), self.compute_dtype)
        Sp = Sp.at[:Nc, :K].set(S.astype(self.compute_dtype))

        sse, best = _mrf_best_match(Sp, self._Tp, self._invnp, self._tn2p,
                                    ns_total=self._Ns, tm=tm_eff,
                                    tn=self._tn_eff, tk=self._tk_eff)
        sse = jnp.maximum(sse[:Nc, 0], 0.0)       # guard cancellation when patches match
        # loss = sum_j mean((synth_j - style_best_j)^2) / Nc
        loss = jnp.sum(sse) / (K * Nc)
        return loss, best[:Nc, 0]

    def forward(self, x):
        loss, best = self._forward_jit(x)
        self.loss = loss
        self.best_idx = best
        return x


# ----------------------------- Reference (pure JAX) -----------------------------

def reference_loss(x, style_patches, patch_size, synth_stride):
    synth = sample_patches(x, patch_size, synth_stride, exclude_center=False)
    Nc = synth.shape[0]
    S = synth.reshape(Nc, -1).astype(jnp.float32)
    T = style_patches.reshape(style_patches.shape[0], -1).astype(jnp.float32)
    norms = jnp.sqrt(jnp.sum(T * T, axis=1))
    scores = jnp.dot(S, T.T, precision=jax.lax.Precision.HIGHEST) / norms[None, :]
    best = jnp.argmax(scores, axis=1)
    diff = S - T[best]
    return jnp.mean(jnp.sum(diff * diff, axis=1) / S.shape[1])


if __name__ == "__main__":
    key = jax.random.PRNGKey(0)
    k_target, k_input = jax.random.split(key)

    C, H, W = 4, 16, 16
    patch_size = 4
    mrf_style_stride = 2
    mrf_synthesis_stride = 2

    target = jax.random.normal(k_target, (1, C, H, W), jnp.float32)
    x = jax.random.normal(k_input, (1, C, H, W), jnp.float32)

    # f32 operands: tight check against the pure-JAX reference.
    mod32 = StyleLossPallas(target, patch_size, mrf_style_stride,
                            mrf_synthesis_stride, gpu_chunck_size=8,
                            compute_dtype=jnp.float32)
    out = jax.block_until_ready(mod32.forward(x))
    loss32 = jax.block_until_ready(mod32.loss)
    ref = reference_loss(x, mod32.style_patches, patch_size, mrf_synthesis_stride)
    assert out.shape == x.shape and bool(jnp.allclose(out, x))
    assert bool(jnp.allclose(loss32, ref, rtol=1e-3, atol=1e-3)), (float(loss32), float(ref))

    # bf16 operands (production default on v6e/v7x): looser tolerance, since bf16
    # rounding can shift dot products and occasionally flip near-tied argmaxes.
    mod16 = StyleLossPallas(target, patch_size, mrf_style_stride,
                            mrf_synthesis_stride, gpu_chunck_size=8,
                            compute_dtype=jnp.bfloat16)
    mod16.forward(x)
    loss16 = jax.block_until_ready(mod16.loss)
    assert bool(jnp.allclose(loss16, ref, rtol=2e-2, atol=2e-2)), (float(loss16), float(ref))

    print("KERNEL_OK")
</pallas_src>

<mosaic_0001>
module attributes {stable_mosaic.version = 11 : i64} {
  func.func @_mrf_kernel(%arg0: i32, %arg1: i32, %arg2: i32, %arg3: memref<56x128xf32, #tpu.memory_space<vmem>>, %arg4: memref<128x128xf32, #tpu.memory_space<vmem>>, %arg5: memref<1x128xf32, #tpu.memory_space<vmem>>, %arg6: memref<1x128xf32, #tpu.memory_space<vmem>>, %arg7: memref<56x1xf32, #tpu.memory_space<vmem>>, %arg8: memref<56x1xi32, #tpu.memory_space<vmem>>, %arg9: memref<56x128xf32, #tpu.memory_space<vmem>>, %arg10: memref<56x1xf32, #tpu.memory_space<vmem>>, %arg11: memref<56x1xf32, #tpu.memory_space<vmem>>, %arg12: memref<56x1xi32, #tpu.memory_space<vmem>>, %arg13: memref<56x1xf32, #tpu.memory_space<vmem>>) attributes {dimension_semantics = [#tpu.dimension_semantics<parallel>, #tpu.dimension_semantics<arbitrary>, #tpu.dimension_semantics<arbitrary>], iteration_bounds = array<i64: 1, 1, 1>, scalar_prefetch = 0 : i64, scratch_operands = 5 : i64, tpu.core_type = #tpu.core_type<tc>, window_params = [{transform_indices = @transform_0, window_bounds = array<i64: 56, 128>}, {transform_indices = @transform_1, window_bounds = array<i64: 128, 128>}, {transform_indices = @transform_2, window_bounds = array<i64: 1, 128>}, {transform_indices = @transform_3, window_bounds = array<i64: 1, 128>}, {transform_indices = @transform_4, window_bounds = array<i64: 56, 1>}, {transform_indices = @transform_5, window_bounds = array<i64: 56, 1>}]} {
    %c0_i32 = arith.constant 0 : i32
    %0 = arith.cmpi eq, %arg1, %c0_i32 : i32
    %c0_i32_0 = arith.constant 0 : i32
    %1 = arith.cmpi eq, %arg2, %c0_i32_0 : i32
    %2 = arith.andi %0, %1 : i1
    %3 = arith.extui %2 : i1 to i32
    %c0_i32_1 = arith.constant 0 : i32
    %4 = arith.cmpi ne, %3, %c0_i32_1 : i32
    scf.if %4 {
      %cst_18 = arith.constant 0xFF800000 : f32
      %25 = vector.broadcast %cst_18 : f32 to vector<56x1xf32>
      %c0_19 = arith.constant 0 : index
      %c0_20 = arith.constant 0 : index
      %26 = vector.load %arg10[%c0_19, %c0_20] : memref<56x1xf32, #tpu.memory_space<vmem>>, vector<56x1xf32>
      tpu.vector_store %arg10[%c0_19, %c0_20], %25 {strides = array<i32>} : memref<56x1xf32, #tpu.memory_space<vmem>>, vector<56x1xf32>,
      %cst_21 = arith.constant 0.000000e+00 : f32
      %27 = vector.broadcast %cst_21 : f32 to vector<56x1xf32>
      %c0_22 = arith.constant 0 : index
      %c0_23 = arith.constant 0 : index
      %28 = vector.load %arg11[%c0_22, %c0_23] : memref<56x1xf32, #tpu.memory_space<vmem>>, vector<56x1xf32>
      tpu.vector_store %arg11[%c0_22, %c0_23], %27 {strides = array<i32>} : memref<56x1xf32, #tpu.memory_space<vmem>>, vector<56x1xf32>,
      %c0_i32_24 = arith.constant 0 : i32
      %29 = vector.broadcast %c0_i32_24 : i32 to vector<56x1xi32>
      %c0_25 = arith.constant 0 : index
      %c0_26 = arith.constant 0 : index
      %30 = vector.load %arg12[%c0_25, %c0_26] : memref<56x1xi32, #tpu.memory_space<vmem>>, vector<56x1xi32>
      tpu.vector_store %arg12[%c0_25, %c0_26], %29 {strides = array<i32>} : memref<56x1xi32, #tpu.memory_space<vmem>>, vector<56x1xi32>,
      %cst_27 = arith.constant 0.000000e+00 : f32
      %31 = vector.broadcast %cst_27 : f32 to vector<56x1xf32>
      %c0_28 = arith.constant 0 : index
      %c0_29 = arith.constant 0 : index
      %32 = vector.load %arg13[%c0_28, %c0_29] : memref<56x1xf32, #tpu.memory_space<vmem>>, vector<56x1xf32>
      tpu.vector_store %arg13[%c0_28, %c0_29], %31 {strides = array<i32>} : memref<56x1xf32, #tpu.memory_space<vmem>>, vector<56x1xf32>,
    } else {
    }
    %c0_i32_2 = arith.constant 0 : i32
    %5 = arith.cmpi eq, %arg2, %c0_i32_2 : i32
    %6 = arith.extui %5 : i1 to i32
    %c0_i32_3 = arith.constant 0 : i32
    %7 = arith.cmpi ne, %6, %c0_i32_3 : i32
    scf.if %7 {
      %cst_18 = arith.constant 0.000000e+00 : f32
      %25 = vector.broadcast %cst_18 : f32 to vector<56x128xf32>
      %c0_19 = arith.constant 0 : index
      %c0_20 = arith.constant 0 : index
      %26 = vector.load %arg9[%c0_19, %c0_20] : memref<56x128xf32, #tpu.memory_space<vmem>>, vector<56x128xf32>
      tpu.vector_store %arg9[%c0_19, %c0_20], %25 {strides = array<i32>} : memref<56x128xf32, #tpu.memory_space<vmem>>, vector<56x128xf32>,
    } else {
    }
    %c0_i32_4 = arith.constant 0 : i32
    %8 = arith.cmpi eq, %arg1, %c0_i32_4 : i32
    %9 = arith.extui %8 : i1 to i32
    %c0_i32_5 = arith.constant 0 : i32
    %10 = arith.cmpi ne, %9, %c0_i32_5 : i32
    scf.if %10 {
      %c0_18 = arith.constant 0 : index
      %c0_19 = arith.constant 0 : index
      %25 = vector.load %arg3[%c0_18, %c0_19] : memref<56x128xf32, #tpu.memory_space<vmem>>, vector<56x128xf32>
      %c0_20 = arith.constant 0 : index
      %c0_21 = arith.constant 0 : index
      %26 = vector.load %arg13[%c0_20, %c0_21] : memref<56x1xf32, #tpu.memory_space<vmem>>, vector<56x1xf32>
      %27 = arith.mulf %25, %25 : vector<56x128xf32>
      %cst_22 = arith.constant dense<0.000000e+00> : vector<56xf32>
      %28 = vector.multi_reduction <add>, %27, %cst_22 [1] : vector<56x128xf32> to vector<56xf32>
      %29 = vector.shape_cast %28 : vector<56xf32> to vector<56x1xf32>
      %30 = arith.addf %26, %29 : vector<56x1xf32>
      %c0_23 = arith.constant 0 : index
      %c0_24 = arith.constant 0 : index
      %31 = vector.load %arg13[%c0_23, %c0_24] : memref<56x1xf32, #tpu.memory_space<vmem>>, vector<56x1xf32>
      tpu.vector_store %arg13[%c0_23, %c0_24], %30 {strides = array<i32>} : memref<56x1xf32, #tpu.memory_space<vmem>>, vector<56x1xf32>,
    } else {
    }
    %c0 = arith.constant 0 : index
    %c0_6 = arith.constant 0 : index
    %11 = vector.load %arg9[%c0, %c0_6] : memref<56x128xf32, #tpu.memory_space<vmem>>, vector<56x128xf32>
    %c0_7 = arith.constant 0 : index
    %c0_8 = arith.constant 0 : index
    %12 = vector.load %arg3[%c0_7, %c0_8] : memref<56x128xf32, #tpu.memory_space<vmem>>, vector<56x128xf32>
    %c0_9 = arith.constant 0 : index
    %c0_10 = arith.constant 0 : index
    %13 = vector.load %arg4[%c0_9, %c0_10] : memref<128x128xf32, #tpu.memory_space<vmem>>, vector<128x128xf32>
    %cst = arith.constant dense<0.000000e+00> : vector<56x128xf32>
    %14 = tpu.matmul %12, %13, %cst {dimension_numbers = #tpu.dot_dimension_numbers<[1], [1], [0], [0], [0, 0, 1, 0], [], []>} : vector<56x128xf32>, vector<128x128xf32>, vector<56x128xf32> -> vector<56x128xf32>
    %15 = arith.addf %11, %14 : vector<56x128xf32>
    %c0_11 = arith.constant 0 : index
    %c0_12 = arith.constant 0 : index
    %16 = vector.load %arg9[%c0_11, %c0_12] : memref<56x128xf32, #tpu.memory_space<vmem>>, vector<56x128xf32>
    tpu.vector_store %arg9[%c0_11, %c0_12], %15 {strides = array<i32>} : memref<56x128xf32, #tpu.memory_space<vmem>>, vector<56x128xf32>,
    %c0_i32_13 = arith.constant 0 : i32
    %17 = arith.cmpi eq, %arg2, %c0_i32_13 : i32
    %18 = arith.extui %17 : i1 to i32
    %c0_i32_14 = arith.constant 0 : i32
    %19 = arith.cmpi ne, %18, %c0_i32_14 : i32
    scf.if %19 {
      %c0_18 = arith.constant 0 : index
      %c0_19 = arith.constant 0 : index
      %25 = vector.load %arg9[%c0_18, %c0_19] : memref<56x128xf32, #tpu.memory_space<vmem>>, vector<56x128xf32>
      %c0_20 = arith.constant 0 : index
      %c0_21 = arith.constant 0 : index
      %26 = vector.load %arg5[%c0_20, %c0_21] : memref<1x128xf32, #tpu.memory_space<vmem>>, vector<1x128xf32>
      %27 = vector.broadcast %26 : vector<1x128xf32> to vector<56x128xf32>
      %28 = arith.mulf %25, %27 : vector<56x128xf32>
      %29 = tpu.iota {dimensions = array<i32: 1>} : vector<56x128xi32>
      %c128_i32 = arith.constant 128 : i32
      %30 = arith.muli %arg1, %c128_i32 : i32
      %31 = vector.broadcast %30 : i32 to vector<56x128xi32>
      %32 = arith.addi %29, %31 : vector<56x128xi32>
      %c40_i32 = arith.constant 40 : i32
      %33 = vector.broadcast %c40_i32 : i32 to vector<56x128xi32>
      %34 = arith.cmpi slt, %32, %33 : vector<56x128xi32>
      %cst_22 = arith.constant 0xFF800000 : f32
      %35 = vector.broadcast %cst_22 : f32 to vector<56x128xf32>
      %36 = arith.select %34, %28, %35 : vector<56x128xi1>, vector<56x128xf32>
      %cst_23 = arith.constant dense<0xFF800000> : vector<56xf32>
      %37 = vector.multi_reduction <maximumf>, %36, %cst_23 [1] : vector<56x128xf32> to vector<56xf32>
      %38 = vector.shape_cast %37 : vector<56xf32> to vector<56x1xf32>
      %39 = arith.sitofp %32 : vector<56x128xi32> to vector<56x128xf32>
      %40 = vector.broadcast %38 : vector<56x1xf32> to vector<56x128xf32>
      %41 = arith.cmpf oeq, %36, %40 : vector<56x128xf32>
      %cst_24 = arith.constant 1.07374182E+9 : f32
      %42 = vector.broadcast %cst_24 : f32 to vector<56x128xf32>
      %43 = arith.select %41, %39, %42 : vector<56x128xi1>, vector<56x128xf32>
      %cst_25 = arith.constant dense<0x7F800000> : vector<56xf32>
      %44 = vector.multi_reduction <minimumf>, %43, %cst_25 [1] : vector<56x128xf32> to vector<56xf32>
      %45 = vector.shape_cast %44 : vector<56xf32> to vector<56x1xf32>
      %46 = vector.broadcast %45 : vector<56x1xf32> to vector<56x128xf32>
      %47 = arith.cmpf oeq, %39, %46 : vector<56x128xf32>
      %c0_26 = arith.constant 0 : index
      %c0_27 = arith.constant 0 : index
      %48 = vector.load %arg6[%c0_26, %c0_27] : memref<1x128xf32, #tpu.memory_space<vmem>>, vector<1x128xf32>
      %cst_28 = arith.constant 2.000000e+00 : f32
      %49 = vector.broadcast %cst_28 : f32 to vector<56x128xf32>
      %50 = arith.mulf %49, %25 : vector<56x128xf32>
      %51 = vector.broadcast %48 : vector<1x128xf32> to vector<56x128xf32>
      %52 = arith.subf %51, %50 : vector<56x128xf32>
      %cst_29 = arith.constant 0.000000e+00 : f32
      %53 = vector.broadcast %cst_29 : f32 to vector<56x128xf32>
      %54 = arith.select %47, %52, %53 : vector<56x128xi1>, vector<56x128xf32>
      %cst_30 = arith.constant dense<0.000000e+00> : vector<56xf32>
      %55 = vector.multi_reduction <add>, %54, %cst_30 [1] : vector<56x128xf32> to vector<56xf32>
      %56 = vector.shape_cast %55 : vector<56xf32> to vector<56x1xf32>
      %c0_31 = arith.constant 0 : index
      %c0_32 = arith.constant 0 : index
      %57 = vector.load %arg10[%c0_31, %c0_32] : memref<56x1xf32, #tpu.memory_space<vmem>>, vector<56x1xf32>
      %58 = arith.cmpf ogt, %38, %57 : vector<56x1xf32>
      %c0_33 = arith.constant 0 : index
      %c0_34 = arith.constant 0 : index
      %59 = vector.load %arg10[%c0_33, %c0_34] : memref<56x1xf32, #tpu.memory_space<vmem>>, vector<56x1xf32>
      %60 = arith.select %58, %38, %59 : vector<56x1xi1>, vector<56x1xf32>
      %c0_35 = arith.constant 0 : index
      %c0_36 = arith.constant 0 : index
      %61 = vector.load %arg10[%c0_35, %c0_36] : memref<56x1xf32, #tpu.memory_space<vmem>>, vector<56x1xf32>
      tpu.vector_store %arg10[%c0_35, %c0_36], %60 {strides = array<i32>} : memref<56x1xf32, #tpu.memory_space<vmem>>, vector<56x1xf32>,
      %c0_37 = arith.constant 0 : index
      %c0_38 = arith.constant 0 : index
      %62 = vector.load %arg11[%c0_37, %c0_38] : memref<56x1xf32, #tpu.memory_space<vmem>>, vector<56x1xf32>
      %63 = arith.select %58, %56, %62 : vector<56x1xi1>, vector<56x1xf32>
      %c0_39 = arith.constant 0 : index
      %c0_40 = arith.constant 0 : index
      %64 = vector.load %arg11[%c0_39, %c0_40] : memref<56x1xf32, #tpu.memory_space<vmem>>, vector<56x1xf32>
      tpu.vector_store %arg11[%c0_39, %c0_40], %63 {strides = array<i32>} : memref<56x1xf32, #tpu.memory_space<vmem>>, vector<56x1xf32>,
      %65 = arith.fptosi %45 : vector<56x1xf32> to vector<56x1xi32>
      %c0_41 = arith.constant 0 : index
      %c0_42 = arith.constant 0 : index
      %66 = vector.load %arg12[%c0_41, %c0_42] : memref<56x1xi32, #tpu.memory_space<vmem>>, vector<56x1xi32>
      %67 = arith.select %58, %65, %66 : vector<56x1xi1>, vector<56x1xi32>
      %c0_43 = arith.constant 0 : index
      %c0_44 = arith.constant 0 : index
      %68 = vector.load %arg12[%c0_43, %c0_44] : memref<56x1xi32, #tpu.memory_space<vmem>>, vector<56x1xi32>
      tpu.vector_store %arg12[%c0_43, %c0_44], %67 {strides = array<i32>} : memref<56x1xi32, #tpu.memory_space<vmem>>, vector<56x1xi32>,
    } else {
    }
    %c0_i32_15 = arith.constant 0 : i32
    %20 = arith.cmpi eq, %arg1, %c0_i32_15 : i32
    %c0_i32_16 = arith.constant 0 : i32
    %21 = arith.cmpi eq, %arg2, %c0_i32_16 : i32
    %22 = arith.andi %20, %21 : i1
    %23 = arith.extui %22 : i1 to i32
    %c0_i32_17 = arith.constant 0 : i32
    %24 = arith.cmpi ne, %23, %c0_i32_17 : i32
    scf.if %24 {
      %c0_18 = arith.constant 0 : index
      %c0_19 = arith.constant 0 : index
      %25 = vector.load %arg13[%c0_18, %c0_19] : memref<56x1xf32, #tpu.memory_space<vmem>>, vector<56x1xf32>
      %c0_20 = arith.constant 0 : index
      %c0_21 = arith.constant 0 : index
      %26 = vector.load %arg11[%c0_20, %c0_21] : memref<56x1xf32, #tpu.memory_space<vmem>>, vector<56x1xf32>
      %27 = arith.addf %25, %26 : vector<56x1xf32>
      %c0_22 = arith.constant 0 : index
      %c0_23 = arith.constant 0 : index
      %28 = vector.load %arg7[%c0_22, %c0_23] : memref<56x1xf32, #tpu.memory_space<vmem>>, vector<56x1xf32>
      tpu.vector_store %arg7[%c0_22, %c0_23], %27 {strides = array<i32>} : memref<56x1xf32, #tpu.memory_space<vmem>>, vector<56x1xf32>,
      %c0_24 = arith.constant 0 : index
      %c0_25 = arith.constant 0 : index
      %29 = vector.load %arg12[%c0_24, %c0_25] : memref<56x1xi32, #tpu.memory_space<vmem>>, vector<56x1xi32>
      %c0_26 = arith.constant 0 : index
      %c0_27 = arith.constant 0 : index
      %30 = vector.load %arg8[%c0_26, %c0_27] : memref<56x1xi32, #tpu.memory_space<vmem>>, vector<56x1xi32>
      tpu.vector_store %arg8[%c0_26, %c0_27], %29 {strides = array<i32>} : memref<56x1xi32, #tpu.memory_space<vmem>>, vector<56x1xi32>,
    } else {
    }
    return
  }
  func.func @transform_0(%arg0: i32, %arg1: i32, %arg2: i32) -> (i32, i32) {
    %c0_i32 = arith.constant 0 : i32
    return %arg0, %arg2 : i32, i32
  }
  func.func @transform_1(%arg0: i32, %arg1: i32, %arg2: i32) -> (i32, i32) {
    %c0_i32 = arith.constant 0 : i32
    return %arg1, %arg2 : i32, i32
  }
  func.func @transform_2(%arg0: i32, %arg1: i32, %arg2: i32) -> (i32, i32) {
    %c0_i32 = arith.constant 0 : i32
    %c0_i32_0 = arith.constant 0 : i32
    return %c0_i32, %arg1 : i32, i32
  }
  func.func @transform_3(%arg0: i32, %arg1: i32, %arg2: i32) -> (i32, i32) {
    %c0_i32 = arith.constant 0 : i32
    %c0_i32_0 = arith.constant 0 : i32
    return %c0_i32, %arg1 : i32, i32
  }
  func.func @transform_4(%arg0: i32, %arg1: i32, %arg2: i32) -> (i32, i32) {
    %c0_i32 = arith.constant 0 : i32
    %c0_i32_0 = arith.constant 0 : i32
    return %arg0, %c0_i32 : i32, i32
  }
  func.func @transform_5(%arg0: i32, %arg1: i32, %arg2: i32) -> (i32, i32) {
    %c0_i32 = arith.constant 0 : i32
    %c0_i32_0 = arith.constant 0 : i32
    return %arg0, %c0_i32 : i32, i32
  }
}

</mosaic_0001>

<bundles_post_ra>
// kernel: _forward_impl.1
= control target key start
LH: loop header
LB: loop body
LE: loop exit
PB: predicated region body
PF: predicated region fallthrough
CT: control target
= control target key end

     0   :  { %v658_v0 = vmov 0.0|0.0   ;;  %vm659_vm0 = vmmov 0   ;;  %v660_v4 = vmov 0.0   ;;  %vm25_vm1 = vcmask 7168   ;;  %s1133_s1 = inlined_call_operand.vmem [shape: f32[128,128], index: 1, kind: input, shape index: {}]   ;;  %s1134_s0 = inlined_call_operand.vmem [shape: f32[56,128], index: 0, kind: input, shape index: {}]   ;;  %s1135_s2 = inlined_call_operand.vmem [shape: f32[1,128], index: 2, kind: input, shape index: {}]   ;;  %s1136_s3 = inlined_call_operand.vmem [shape: f32[1,128], index: 3, kind: input, shape index: {}]   ;;  %s1137_s5 = inlined_call_operand.vmem [shape: s32[56,1], index: 5, kind: output, shape index: {1}]   ;;  %s1138_s4 = inlined_call_operand.vmem [shape: f32[56,1], index: 4, kind: output, shape index: {0}]  }
   0x1   :  { %599 = vmatprep.subr.bf16.mxu0 %v658_v0  ;;  %v131_v1 = vld [vmem:[%s1133_s1] sm:$0xff]  ;;  %v132_v2 = vld [vmem:[%s1133_s1 + $0x8] sm:$0xff]  ;;  %623 = vmatprep.subr.bf16.mxu1 %v658_v0  ;;  %v133_v5 = vld [vmem:[%s1133_s1 + $0x10] sm:$0xff]  ;;  %v661_v33 = vmov -inf   ;;  %33 = vst.msk [vmem:[#allocation4] sm:$0xff] %vm25_vm1, %v660_v4  ;;  %v285_v34 = vlaneseq }
   0x2   :  { %v600_v3 = vpack.c.bf16 %v132_v2, %v131_v1  ;;  %578 = vmatprep.mubr.msk.f32.mxu0 %vm659_vm0, %v660_v4  ;;  %590 = vmatprep.mubr.msk.f32.mxu1 %vm659_vm0, %v660_v4  ;;  %v134_v6 = vld [vmem:[%s1133_s1 + $0x18] sm:$0xff]  ;;  %v135_v8 = vld [vmem:[%s1133_s1 + $0x20] sm:$0xff]  ;;  %v136_v9 = vld [vmem:[%s1133_s1 + $0x28] sm:$0xff]  ;;  %26 = vst.msk [vmem:[#allocation3] sm:$0xff] %vm25_vm1, %v661_v33  ;;  %v662_v1 = vmov 0  }
   0x3   :  { %v603_v7 = vpack.c.bf16 %v134_v6, %v133_v5  ;;  %v606_v10 = vpack.c.bf16 %v136_v9, %v135_v8  ;;  %v137_v11 = vld [vmem:[%s1133_s1 + $0x30] sm:$0xff]  ;;  %v138_v12 = vld [vmem:[%s1133_s1 + $0x38] sm:$0xff]  ;;  %v139_v14 = vld [vmem:[%s1133_s1 + $0x40] sm:$0xff]  ;;  %27 = vst.msk [vmem:[#allocation3 + $0x8] sm:$0xff] %vm25_vm1, %v661_v33  ;;  %v286_v35 = vand.u32 127, %v285_v34 }
   0x4   :  { %601 = vmatpush3.bf16.xpose.msra.mxu0 %v600_v3  ;;  %631 = vmatpush3.bf16.xpose.msra.mxu1 %v600_v3  ;;  %v609_v13 = vpack.c.bf16 %v138_v12, %v137_v11  ;;  %v140_v15 = vld [vmem:[%s1133_s1 + $0x48] sm:$0xff]  ;;  %v141_v17 = vld [vmem:[%s1133_s1 + $0x50] sm:$0xff]  ;;  %v142_v18 = vld [vmem:[%s1133_s1 + $0x58] sm:$0xff]  ;;  %28 = vst.msk [vmem:[#allocation3 + $0x10] sm:$0xff] %vm25_vm1, %v661_v33 }
   0x5   :  { %602 = vmatprep.subr.bf16.mxu0 %v658_v0  ;;  %624 = vmatprep.subr.bf16.mxu1 %v658_v0  ;;  %v612_v16 = vpack.c.bf16 %v140_v15, %v139_v14  ;;  %v615_v19 = vpack.c.bf16 %v142_v18, %v141_v17  ;;  %v143_v20 = vld [vmem:[%s1133_s1 + $0x60] sm:$0xff]  ;;  %v144_v21 = vld [vmem:[%s1133_s1 + $0x68] sm:$0xff]  ;;  %v145_v23 = vld [vmem:[%s1133_s1 + $0x70] sm:$0xff]  ;;  %29 = vst.msk [vmem:[#allocation3 + $0x18] sm:$0xff] %vm25_vm1, %v661_v33  ;;  %vm290_vm2 = vcmp.lt.s32.totalorder %v286_v35, 40  ;;  %v873_v2 = vcvt.s32.f32 %v286_v35 }
   0x6   :  { %v618_v22 = vpack.c.bf16 %v144_v21, %v143_v20  ;;  %v146_v24 = vld [vmem:[%s1133_s1 + $0x78] sm:$0xff]  ;;  %v748_v26 = vld [vmem:[%s1134_s0] sm:$0xff]  ;;  %v762_v28 = vld [vmem:[%s1134_s0 + $0x8] sm:$0xff]  ;;  %30 = vst.msk [vmem:[#allocation3 + $0x20] sm:$0xff] %vm25_vm1, %v661_v33 }
   0x7   :  { %v621_v25 = vpack.c.bf16 %v146_v24, %v145_v23  ;;  %v753_v27 = vld [vmem:[%s1134_s0 + $0x20] sm:$0xff]  ;;  %v769_v29 = vld [vmem:[%s1134_s0 + $0x28] sm:$0xff]  ;;  %v778_v30 = vld [vmem:[%s1134_s0 + $0x10] sm:$0xff]  ;;  %31 = vst.msk [vmem:[#allocation3 + $0x28] sm:$0xff] %vm25_vm1, %v661_v33  ;;  %v82_v35 = vmul.f32 %v762_v28, %v762_v28 }
   0x8   :  { %v785_v31 = vld [vmem:[%s1134_s0 + $0x30] sm:$0xff]  ;;  %v794_v32 = vld [vmem:[%s1134_s0 + $0x18] sm:$0xff]  ;;  %32 = vst.msk [vmem:[#allocation3 + $0x30] sm:$0xff] %vm25_vm1, %v661_v33  ;;  %34 = vst.msk [vmem:[#allocation4 + $0x8] sm:$0xff] %vm25_vm1, %v660_v4 }
   0x9   :  { %35 = vst.msk [vmem:[#allocation4 + $0x10] sm:$0xff] %vm25_vm1, %v660_v4  ;;  %36 = vst.msk [vmem:[#allocation4 + $0x18] sm:$0xff] %vm25_vm1, %v660_v4  ;;  %v521_v36 = vld [vmem:[%s1135_s2] ss:$0 sm:$0xff] }
   0xa   :  { %37 = vst.msk [vmem:[#allocation4 + $0x20] sm:$0xff] %vm25_vm1, %v660_v4  ;;  %38 = vst.msk [vmem:[#allocation4 + $0x28] sm:$0xff] %vm25_vm1, %v660_v4  ;;  %v875_v3 = vld [vmem:[#allocation3] sm:$0xff]  ;;  %v902_v11 = vld [vmem:[#allocation3 + $0x8] sm:$0xff] }
   0xb   :  { %39 = vst.msk [vmem:[#allocation4 + $0x30] sm:$0xff] %vm25_vm1, %v660_v4  ;;  %47 = vst.msk [vmem:[#allocation6] sm:$0xff] %vm25_vm1, %v660_v4  ;;  %v904_v12 = vld [vmem:[#allocation3 + $0x10] sm:$0xff] }
   0xc   :  { %604 = vmatpush3.bf16.xpose.msra.mxu0 %v603_v7  ;;  %632 = vmatpush3.bf16.xpose.msra.mxu1 %v603_v7  ;;  %48 = vst.msk [vmem:[#allocation6 + $0x8] sm:$0xff] %vm25_vm1, %v660_v4  ;;  %49 = vst.msk [vmem:[#allocation6 + $0x10] sm:$0xff] %vm25_vm1, %v660_v4  ;;  %v931_v20 = vld [vmem:[#allocation3 + $0x18] sm:$0xff] }
   0xd   :  { %605 = vmatprep.subr.bf16.mxu0 %v658_v0  ;;  %625 = vmatprep.subr.bf16.mxu1 %v658_v0  ;;  %50 = vst.msk [vmem:[#allocation6 + $0x18] sm:$0xff] %vm25_vm1, %v660_v4  ;;  %51 = vst.msk [vmem:[#allocation6 + $0x20] sm:$0xff] %vm25_vm1, %v660_v4  ;;  %v888_v7 = vld [vmem:[#allocation3 + $0x20] sm:$0xff] }
   0xe   :  { %52 = vst.msk [vmem:[#allocation6 + $0x28] sm:$0xff] %vm25_vm1, %v660_v4  ;;  %53 = vst.msk [vmem:[#allocation6 + $0x30] sm:$0xff] %vm25_vm1, %v660_v4  ;;  %v957_v34 = vld [vmem:[#allocation3 + $0x28] sm:$0xff] }
   0xf   :  { %40 = vst.msk [vmem:[#allocation5] sm:$0xff] %vm25_vm1, %v662_v1  ;;  %41 = vst.msk [vmem:[#allocation5 + $0x8] sm:$0xff] %vm25_vm1, %v662_v1 }
  0x10   :  { %42 = vst.msk [vmem:[#allocation5 + $0x10] sm:$0xff] %vm25_vm1, %v662_v1  ;;  %43 = vst.msk [vmem:[#allocation5 + $0x18] sm:$0xff] %vm25_vm1, %v662_v1 }
  0x11   :  { %44 = vst.msk [vmem:[#allocation5 + $0x20] sm:$0xff] %vm25_vm1, %v662_v1  ;;  %45 = vst.msk [vmem:[#allocation5 + $0x28] sm:$0xff] %vm25_vm1, %v662_v1 }
  0x12   :  { %46 = vst.msk [vmem:[#allocation5 + $0x30] sm:$0xff] %vm25_vm1, %v662_v1 }
  0x14   :  { %607 = vmatpush3.bf16.xpose.msra.mxu0 %v606_v10  ;;  %633 = vmatpush3.bf16.xpose.msra.mxu1 %v606_v10 }
  0x15   :  { %608 = vmatprep.subr.bf16.mxu0 %v658_v0  ;;  %626 = vmatprep.subr.bf16.mxu1 %v658_v0 }
  0x1c   :  { %610 = vmatpush3.bf16.xpose.msra.mxu0 %v609_v13  ;;  %634 = vmatpush3.bf16.xpose.msra.mxu1 %v609_v13 }
  0x1d   :  { %611 = vmatprep.subr.bf16.mxu0 %v658_v0  ;;  %627 = vmatprep.subr.bf16.mxu1 %v658_v0 }
  0x24   :  { %613 = vmatpush3.bf16.xpose.msra.mxu0 %v612_v16  ;;  %635 = vmatpush3.bf16.xpose.msra.mxu1 %v612_v16 }
  0x25   :  { %614 = vmatprep.subr.bf16.mxu0 %v658_v0  ;;  %628 = vmatprep.subr.bf16.mxu1 %v658_v0 }
  0x2c   :  { %616 = vmatpush3.bf16.xpose.msra.mxu0 %v615_v19  ;;  %636 = vmatpush3.bf16.xpose.msra.mxu1 %v615_v19  ;;  %v929_v19 = vld [vmem:[#allocation3 + $0x30] sm:$0xff] }
  0x2d   :  { %617 = vmatprep.subr.bf16.mxu0 %v658_v0  ;;  %629 = vmatprep.subr.bf16.mxu1 %v658_v0 }
  0x34   :  { %619 = vmatpush3.bf16.xpose.msra.mxu0 %v618_v22  ;;  %637 = vmatpush3.bf16.xpose.msra.mxu1 %v618_v22 }
  0x35   :  { %620 = vmatprep.subr.bf16.mxu0 %v658_v0  ;;  %630 = vmatprep.subr.bf16.mxu1 %v658_v0 }
  0x3c   :  { %622 = vmatpush3.bf16.xpose.msra.mxu0 %v621_v25  ;;  %638 = vmatpush3.bf16.xpose.msra.mxu1 %v621_v25 }
  0x43   :  { %579 = vmatmul.mubr.f32.vlgmr.msra.gmra.mrb[0].mxu0 %v748_v26  ;;  %591 = vmatmul.mubr.f32.vlgmr.msra.gmra.mrb[0].mxu1 %v753_v27 }
  0x44   :  { %581 = vmatprep.mubr.msk.f32.mxu0 %vm659_vm0, %v660_v4  ;;  %593 = vmatprep.mubr.msk.f32.mxu1 %vm659_vm0, %v660_v4 }
  0x47   :  { %582 = vmatmul.mubr.f32.gmra.mrb[2].mxu0 %v762_v28  ;;  %594 = vmatmul.mubr.f32.gmra.mrb[2].mxu1 %v769_v29  ;;  %v84_v28 = vmul.f32 %v794_v32, %v794_v32 }
  0x48   :  { %584 = vmatprep.mubr.msk.f32.mxu0 %vm659_vm0, %v660_v4  ;;  %596 = vmatprep.mubr.msk.f32.mxu1 %vm659_vm0, %v660_v4 }
  0x4b   :  { %585 = vmatmul.mubr.f32.gmra.mrb[4].mxu0 %v778_v30  ;;  %597 = vmatmul.mubr.f32.gmra.mrb[4].mxu1 %v785_v31 }
  0x4c   :  { %587 = vmatprep.mubr.msk.f32.mxu0 %vm659_vm0, %v660_v4 }
  0x4f   :  { %588 = vmatmul.mubr.f32.gmra.mrb[6].mxu0 %v794_v32  ;;  %v87_v32 = vmul.f32 %v785_v31, %v785_v31 }
 0x116   :  { %v835_v37 = vpop.f32.mrb[0].mxu0  ;;  %v837_v38 = vpop.f32.mrb[0].mxu1 }
 0x117   :  { %v278_v39 = vmul.f32 %v521_v36, %v835_v37  ;;  %v580_v40 = vpop.f32.mrb[1].mxu0  ;;  %v282_v41 = vmul.f32 %v521_v36, %v837_v38  ;;  %v592_v42 = vpop.f32.mrb[1].mxu1 }
 0x118   :  { %v86_v42 = vmul.f32 %v769_v29, %v769_v29  ;;  %v353_v29 = vmul.f32 2.0, %v837_v38 }
 0x119   :  { %v291_v43 = vsel %vm290_vm2, %v278_v39, -inf  ;;  %v295_v47 = vsel %vm290_vm2, %v282_v41, -inf  ;;  %v81_v41 = vmul.f32 %v748_v26, %v748_v26  ;;  %v349_v26 = vmul.f32 2.0, %v835_v37 }
 0x11a   :  { %298 = vmax.xlane.f32.xlu0 %v291_v43  ;;  %v842_v44 = vpop.f32.mrb[2].mxu0  ;;  %v844_v45 = vpop.f32.mrb[2].mxu1 }
 0x11b   :  { %v583_v46 = vpop.f32.mrb[3].mxu0  ;;  %v595_v48 = vpop.f32.mrb[3].mxu1  ;;  %v279_v49 = vmul.f32 %v521_v36, %v842_v44  ;;  %v283_v62 = vmul.f32 %v521_v36, %v844_v45  ;;  %v350_v31 = vmul.f32 2.0, %v842_v44 }
 0x11c   :  { %v85_v46 = vmul.f32 %v753_v27, %v753_v27  ;;  %v447_v27 = vld [vmem:[#allocation5] sm:$0xff] }
 0x11d   :  { %v292_v56 = vsel %vm290_vm2, %v279_v49, -inf  ;;  %v863_v0 = vsel %vm290_vm2, %v283_v62, -inf }
 0x11e   :  { %306 = vmax.xlane.f32.xlu0 %v295_v47  ;;  %v848_v50 = vpop.f32.mrb[4].mxu0  ;;  %v850_v51 = vpop.f32.mrb[4].mxu1 }
 0x11f   :  { %v280_v52 = vmul.f32 %v521_v36, %v848_v50  ;;  %v586_v53 = vpop.f32.mrb[5].mxu0  ;;  %v284_v54 = vmul.f32 %v521_v36, %v850_v51  ;;  %v598_v55 = vpop.f32.mrb[5].mxu1  ;;  %v351_v37 = vmul.f32 2.0, %v848_v50  ;;  %v355_v44 = vmul.f32 2.0, %v850_v51  ;;  %v449_v51 = vld [vmem:[#allocation5 + $0x10] sm:$0xff] }
 0x121   :  { %v293_v57 = vsel %vm290_vm2, %v280_v52, -inf  ;;  %v297_v61 = vsel %vm290_vm2, %v284_v54, -inf }
 0x122   :  { %300 = vmax.xlane.f32.xlu0 %v292_v56  ;;  %302 = vmax.xlane.f32.xlu1 %v293_v57  ;;  %v856_v58 = vpop.f32.mrb[6].mxu0 }
 0x123   :  { %v281_v59 = vmul.f32 %v521_v36, %v856_v58  ;;  %v589_v60 = vpop.f32.mrb[7].mxu0  ;;  %v352_v50 = vmul.f32 2.0, %v856_v58 }
 0x125   :  { %v294_v63 = vsel %vm290_vm2, %v281_v59, -inf }
 0x126   :  { %310 = vmax.xlane.f32.xlu0 %v297_v61  ;;  %304 = vmax.xlane.f32.xlu1 %v294_v63 }
 0x12a   :  { %308 = vmax.xlane.f32.xlu1 %v863_v0 }
 0x1a7   :  { %v877_v4 = vpop.xlane.xlu0 %298 }
 0x1a8   :  { %vm397_vm3 = vcmp.gt.f32.partialorder %v877_v4, %v875_v3  ;;  %vm313_vm4 = vcmp.eq.f32.partialorder %v291_v43, %v877_v4  ;;  %v83_v43 = vmul.f32 %v778_v30, %v778_v30 }
 0x1a9   :  { %v404_v5 = vsel %vm397_vm3, %v877_v4, %v875_v3  ;;  %v320_v6 = vsel %vm313_vm4, %v873_v2, 1.0737418e+09 }
 0x1aa   :  { %412 = vst.msk [vmem:[#allocation3] sm:$0xff] %vm25_vm1, %v404_v5  ;;  %327 = vmin.xlane.f32.xlu1 %v320_v6 }
 0x1ab   :  { %v891_v8 = vpop.xlane.xlu0 %306 }
 0x1ac   :  { %vm401_vm5 = vcmp.gt.f32.partialorder %v891_v8, %v888_v7  ;;  %vm317_vm6 = vcmp.eq.f32.partialorder %v295_v47, %v891_v8  ;;  %v992_v47 = vld [vmem:[%s1136_s3] ss:$0 sm:$0xff] }
 0x1ad   :  { %v408_v9 = vsel %vm401_vm5, %v891_v8, %v888_v7  ;;  %v324_v10 = vsel %vm317_vm6, %v873_v2, 1.0737418e+09  ;;  %v362_v48 = vsub.f32 %v992_v47, %v349_v26  ;;  %v366_v55 = vsub.f32 %v992_v47, %v353_v29  ;;  %v75_v26 = vld [vmem:[#allocation6 + $0x8] sm:$0xff]  ;;  %v425_v8 = vld [vmem:[#allocation4 + $0x30] sm:$0xff] }
 0x1ae   :  { %416 = vst.msk [vmem:[#allocation3 + $0x20] sm:$0xff] %vm25_vm1, %v408_v9  ;;  %335 = vmin.xlane.f32.xlu1 %v324_v10  ;;  %v448_v9 = vld [vmem:[#allocation5 + $0x8] sm:$0xff] }
 0x1af   :  { %v907_v13 = vpop.xlane.xlu0 %300  ;;  %v909_v14 = vpop.xlane.xlu1 %302 }
 0x1b0   :  { %vm398_vm7 = vcmp.gt.f32.partialorder %v907_v13, %v902_v11  ;;  %vm399_vm8 = vcmp.gt.f32.partialorder %v909_v14, %v904_v12  ;;  %vm314_vm9 = vcmp.eq.f32.partialorder %v292_v56, %v907_v13  ;;  %vm315_vm10 = vcmp.eq.f32.partialorder %v293_v57, %v909_v14  ;;  %v451_v57 = vld [vmem:[#allocation5 + $0x20] sm:$0xff] }
 0x1b1   :  { %v405_v15 = vsel %vm398_vm7, %v907_v13, %v902_v11  ;;  %v406_v16 = vsel %vm399_vm8, %v909_v14, %v904_v12  ;;  %v321_v17 = vsel %vm314_vm9, %v873_v2, 1.0737418e+09  ;;  %v322_v18 = vsel %vm315_vm10, %v873_v2, 1.0737418e+09  ;;  %v424_v13 = vld [vmem:[#allocation4 + $0x28] sm:$0xff] }
 0x1b2   :  { %413 = vst.msk [vmem:[#allocation3 + $0x8] sm:$0xff] %vm25_vm1, %v405_v15  ;;  %414 = vst.msk [vmem:[#allocation3 + $0x10] sm:$0xff] %vm25_vm1, %v406_v16  ;;  %329 = vmin.xlane.f32.xlu0 %v321_v17  ;;  %331 = vmin.xlane.f32.xlu1 %v322_v18  ;;  %v354_v17 = vmul.f32 2.0, %v844_v45  ;;  %v450_v45 = vld [vmem:[#allocation5 + $0x18] sm:$0xff] }
 0x1b3   :  { %v935_v21 = vpop.xlane.xlu0 %310  ;;  %v937_v22 = vpop.xlane.xlu1 %304 }
 0x1b4   :  { %vm403_vm11 = vcmp.gt.f32.partialorder %v935_v21, %v929_v19  ;;  %vm400_vm12 = vcmp.gt.f32.partialorder %v937_v22, %v931_v20  ;;  %vm319_vm13 = vcmp.eq.f32.partialorder %v297_v61, %v935_v21  ;;  %vm316_vm14 = vcmp.eq.f32.partialorder %v294_v63, %v937_v22 }
 0x1b5   :  { %v410_v23 = vsel %vm403_vm11, %v935_v21, %v929_v19  ;;  %v407_v24 = vsel %vm400_vm12, %v937_v22, %v931_v20  ;;  %v326_v25 = vsel %vm319_vm13, %v873_v2, 1.0737418e+09  ;;  %v323_v33 = vsel %vm316_vm14, %v873_v2, 1.0737418e+09 }
 0x1b6   :  { %418 = vst.msk [vmem:[#allocation3 + $0x30] sm:$0xff] %vm25_vm1, %v410_v23  ;;  %415 = vst.msk [vmem:[#allocation3 + $0x18] sm:$0xff] %vm25_vm1, %v407_v24  ;;  %339 = vmin.xlane.f32.xlu1 %v326_v25  ;;  %333 = vmin.xlane.f32.xlu0 %v323_v33  ;;  %v364_v63 = vsub.f32 %v992_v47, %v351_v37  ;;  %v368_v24 = vsub.f32 %v992_v47, %v355_v44 }
 0x1b7   :  { %v963_v36 = vpop.xlane.xlu1 %308  ;;  %v365_v25 = vsub.f32 %v992_v47, %v352_v50 }
 0x1b8   :  { %vm402_vm15 = vcmp.gt.f32.partialorder %v963_v36, %v957_v34  ;;  %vm318_vm0 = vcmp.eq.f32.partialorder %v863_v0, %v963_v36  ;;  %v363_v0 = vsub.f32 %v992_v47, %v350_v31 }
 0x1b9   :  { %v409_v39 = vsel %vm402_vm15, %v963_v36, %v957_v34  ;;  %v325_v40 = vsel %vm318_vm0, %v873_v2, 1.0737418e+09 }
 0x1ba   :  { %417 = vst.msk [vmem:[#allocation3 + $0x28] sm:$0xff] %vm25_vm1, %v409_v39  ;;  %337 = vmin.xlane.f32.xlu0 %v325_v40  ;;  %90 = vadd.xlane.f32.xlu1 %v82_v35 }
 0x1be   :  { %94 = vadd.xlane.f32.xlu1 %v84_v28  ;;  %88 = vadd.xlane.f32.xlu0 %v81_v41  ;;  %v453_v41 = vld [vmem:[#allocation5 + $0x30] sm:$0xff] }
 0x1c2   :  { %98 = vadd.xlane.f32.xlu1 %v86_v42  ;;  %92 = vadd.xlane.f32.xlu0 %v83_v43 }
 0x1c6   :  { %96 = vadd.xlane.f32.xlu0 %v85_v46 }
 0x1ca   :  { %100 = vadd.xlane.f32.xlu0 %v87_v32 }
 0x237   :  { %v328_v30 = vpop.xlane.xlu1 %327 }
 0x238   :  { %v639_v49 = vtrunc.f32 %v328_v30  ;;  %vm341_vm2 = vcmp.eq.f32.partialorder %v873_v2, %v328_v30  ;;  %v367_v30 = vsub.f32 %v992_v47, %v354_v17  ;;  %v452_v47 = vld [vmem:[#allocation5 + $0x28] sm:$0xff] }
 0x239   :  { %v369_v52 = vsel %vm341_vm2, %v362_v48, 0.0 }
 0x23a   :  { %v640_v53 = vcvt.f32.s32 %v639_v49  ;;  %376 = vadd.xlane.f32.xlu1 %v369_v52 }
 0x23b   :  { %v336_v54 = vpop.xlane.xlu1 %335 }
 0x23c   :  { %v454_v38 = vsel %vm397_vm3, %v640_v53, %v447_v27  ;;  %v647_v56 = vtrunc.f32 %v336_v54  ;;  %vm345_vm4 = vcmp.eq.f32.partialorder %v873_v2, %v336_v54  ;;  %v77_v54 = vld [vmem:[#allocation6 + $0x18] sm:$0xff] }
 0x23d   :  { %461 = vst.msk [vmem:[#allocation5] sm:$0xff] %vm25_vm1, %v454_v38  ;;  %v373_v59 = vsel %vm345_vm4, %v366_v55, 0.0  ;;  %v74_v55 = vld [vmem:[#allocation6] sm:$0xff] }
 0x23e   :  { %v648_v60 = vcvt.f32.s32 %v647_v56  ;;  %384 = vadd.xlane.f32.xlu1 %v373_v59 }
 0x23f   :  { %v330_v61 = vpop.xlane.xlu0 %329  ;;  %v332_v62 = vpop.xlane.xlu1 %331 }
 0x240   :  { %v458_v1 = vsel %vm401_vm5, %v648_v60, %v451_v57  ;;  %v641_v5 = vtrunc.f32 %v330_v61  ;;  %v643_v6 = vtrunc.f32 %v332_v62  ;;  %vm343_vm6 = vcmp.eq.f32.partialorder %v873_v2, %v332_v62  ;;  %v76_v62 = vld [vmem:[#allocation6 + $0x10] sm:$0xff] }
 0x241   :  { %465 = vst.msk [vmem:[#allocation5 + $0x20] sm:$0xff] %vm25_vm1, %v458_v1  ;;  %v371_v10 = vsel %vm343_vm6, %v364_v63, 0.0  ;;  %vm342_vm9 = vcmp.eq.f32.partialorder %v873_v2, %v330_v61  ;;  %v79_v61 = vld [vmem:[#allocation6 + $0x28] sm:$0xff] }
 0x242   :  { %v642_v58 = vcvt.f32.s32 %v641_v5  ;;  %v644_v15 = vcvt.f32.s32 %v643_v6  ;;  %380 = vadd.xlane.f32.xlu1 %v371_v10  ;;  %v370_v16 = vsel %vm342_vm9, %v363_v0, 0.0 }
 0x243   :  { %378 = vadd.xlane.f32.xlu0 %v370_v16  ;;  %v334_v18 = vpop.xlane.xlu0 %333  ;;  %v340_v23 = vpop.xlane.xlu1 %339  ;;  %v80_v16 = vld [vmem:[#allocation6 + $0x30] sm:$0xff] }
 0x244   :  { %v499_v33 = vld [vmem:[#allocation5] sm:$0xff]  ;;  %v455_v35 = vsel %vm398_vm7, %v642_v58, %v448_v9  ;;  %v456_v39 = vsel %vm399_vm8, %v644_v15, %v449_v51  ;;  %v645_v40 = vtrunc.f32 %v334_v18  ;;  %v651_v28 = vtrunc.f32 %v340_v23  ;;  %v78_v51 = vld [vmem:[#allocation6 + $0x20] sm:$0xff] }
 0x245   :  { %506 = vst.msk [vmem:[%s1137_s5] sm:$0xff] %vm25_vm1, %v499_v33  ;;  %462 = vst.msk [vmem:[#allocation5 + $0x8] sm:$0xff] %vm25_vm1, %v455_v35  ;;  %vm347_vm10 = vcmp.eq.f32.partialorder %v873_v2, %v340_v23  ;;  %vm344_vm13 = vcmp.eq.f32.partialorder %v873_v2, %v334_v18  ;;  %v419_v23 = vld [vmem:[#allocation4] sm:$0xff] }
 0x246   :  { %463 = vst.msk [vmem:[#allocation5 + $0x10] sm:$0xff] %vm25_vm1, %v456_v39  ;;  %v646_v42 = vcvt.f32.s32 %v645_v40  ;;  %v652_v43 = vcvt.f32.s32 %v651_v28  ;;  %v375_v46 = vsel %vm347_vm10, %v368_v24, 0.0  ;;  %v372_v32 = vsel %vm344_vm13, %v365_v25, 0.0  ;;  %v423_v33 = vld [vmem:[#allocation4 + $0x20] sm:$0xff]  ;;  %v421_v40 = vld [vmem:[#allocation4 + $0x10] sm:$0xff]  ;;  %v420_v28 = vld [vmem:[#allocation4 + $0x8] sm:$0xff] }
 0x247   :  { %388 = vadd.xlane.f32.xlu1 %v375_v46  ;;  %382 = vadd.xlane.f32.xlu0 %v372_v32  ;;  %v338_v29 = vpop.xlane.xlu0 %337  ;;  %v91_v48 = vpop.xlane.xlu1 %90  ;;  %v422_v46 = vld [vmem:[#allocation4 + $0x18] sm:$0xff] }
 0x248   :  { %v503_v49 = vld [vmem:[#allocation5 + $0x20] sm:$0xff]  ;;  %v457_v27 = vsel %vm400_vm12, %v646_v42, %v450_v45  ;;  %v460_v52 = vsel %vm403_vm11, %v652_v43, %v453_v41  ;;  %v649_v53 = vtrunc.f32 %v338_v29  ;;  %vm346_vm14 = vcmp.eq.f32.partialorder %v873_v2, %v338_v29 }
 0x249   :  { %510 = vst.msk [vmem:[%s1137_s5 + $0x20] sm:$0xff] %vm25_vm1, %v503_v49  ;;  %464 = vst.msk [vmem:[#allocation5 + $0x18] sm:$0xff] %vm25_vm1, %v457_v27  ;;  %v374_v31 = vsel %vm346_vm14, %v367_v30, 0.0  ;;  %v103_v37 = vadd.f32 %v91_v48, %v75_v26 }
 0x24a   :  { %467 = vst.msk [vmem:[#allocation5 + $0x30] sm:$0xff] %vm25_vm1, %v460_v52  ;;  %v650_v38 = vcvt.f32.s32 %v649_v53 }
 0x24b   :  { %386 = vadd.xlane.f32.xlu0 %v374_v31  ;;  %111 = vst.msk [vmem:[#allocation6 + $0x8] sm:$0xff] %vm25_vm1, %v103_v37  ;;  %v95_v56 = vpop.xlane.xlu1 %94  ;;  %v89_v2 = vpop.xlane.xlu0 %88 }
 0x24c   :  { %v500_v57 = vld [vmem:[#allocation5 + $0x8] sm:$0xff]  ;;  %v459_v60 = vsel %vm402_vm15, %v650_v38, %v452_v47  ;;  %v105_v44 = vadd.f32 %v95_v56, %v77_v54  ;;  %v102_v50 = vadd.f32 %v89_v2, %v74_v55 }
 0x24d   :  { %v501_v59 = vld [vmem:[#allocation5 + $0x10] sm:$0xff]  ;;  %507 = vst.msk [vmem:[%s1137_s5 + $0x8] sm:$0xff] %vm25_vm1, %v500_v57  ;;  %466 = vst.msk [vmem:[#allocation5 + $0x28] sm:$0xff] %vm25_vm1, %v459_v60 }
 0x24e   :  { %508 = vst.msk [vmem:[%s1137_s5 + $0x10] sm:$0xff] %vm25_vm1, %v501_v59  ;;  %113 = vst.msk [vmem:[#allocation6 + $0x18] sm:$0xff] %vm25_vm1, %v105_v44 }
 0x24f   :  { %110 = vst.msk [vmem:[#allocation6] sm:$0xff] %vm25_vm1, %v102_v50  ;;  %v99_v63 = vpop.xlane.xlu1 %98  ;;  %v93_v0 = vpop.xlane.xlu0 %92 }
 0x250   :  { %v502_v1 = vld [vmem:[#allocation5 + $0x18] sm:$0xff]  ;;  %v107_v6 = vadd.f32 %v99_v63, %v79_v61  ;;  %v104_v9 = vadd.f32 %v93_v0, %v76_v62 }
 0x251   :  { %v505_v5 = vld [vmem:[#allocation5 + $0x30] sm:$0xff]  ;;  %509 = vst.msk [vmem:[%s1137_s5 + $0x18] sm:$0xff] %vm25_vm1, %v502_v1 }
 0x252   :  { %512 = vst.msk [vmem:[%s1137_s5 + $0x30] sm:$0xff] %vm25_vm1, %v505_v5  ;;  %115 = vst.msk [vmem:[#allocation6 + $0x28] sm:$0xff] %vm25_vm1, %v107_v6  ;;  %v471_v52 = vld [vmem:[#allocation6 + $0x8] sm:$0xff] }
 0x253   :  { %112 = vst.msk [vmem:[#allocation6 + $0x10] sm:$0xff] %vm25_vm1, %v104_v9  ;;  %v97_v10 = vpop.xlane.xlu0 %96 }
 0x254   :  { %v504_v58 = vld [vmem:[#allocation5 + $0x28] sm:$0xff]  ;;  %v106_v15 = vadd.f32 %v97_v10, %v78_v51 }
 0x255   :  { %511 = vst.msk [vmem:[%s1137_s5 + $0x28] sm:$0xff] %vm25_vm1, %v504_v58  ;;  %v473_v53 = vld [vmem:[#allocation6 + $0x18] sm:$0xff] }
 0x256   :  { %114 = vst.msk [vmem:[#allocation6 + $0x20] sm:$0xff] %vm25_vm1, %v106_v15  ;;  %v470_v41 = vld [vmem:[#allocation6] sm:$0xff] }
 0x257   :  { %v101_v17 = vpop.xlane.xlu0 %100 }
 0x258   :  { %v108_v18 = vadd.f32 %v101_v17, %v80_v16 }
 0x259   :  { %v475_v36 = vld [vmem:[#allocation6 + $0x28] sm:$0xff] }
 0x25a   :  { %116 = vst.msk [vmem:[#allocation6 + $0x30] sm:$0xff] %vm25_vm1, %v108_v18  ;;  %v472_v48 = vld [vmem:[#allocation6 + $0x10] sm:$0xff] }
 0x25d   :  { %v474_v32 = vld [vmem:[#allocation6 + $0x20] sm:$0xff] }
 0x261   :  { %v476_v47 = vld [vmem:[#allocation6 + $0x30] sm:$0xff] }
 0x2c7   :  { %v377_v24 = vpop.xlane.xlu1 %376 }
 0x2c8   :  { %v426_v25 = vsel %vm397_vm3, %v377_v24, %v419_v23 }
 0x2c9   :  { %433 = vst.msk [vmem:[#allocation4] sm:$0xff] %vm25_vm1, %v426_v25 }
 0x2cb   :  { %v385_v35 = vpop.xlane.xlu1 %384 }
 0x2cc   :  { %v430_v39 = vsel %vm401_vm5, %v385_v35, %v423_v33 }
 0x2cd   :  { %437 = vst.msk [vmem:[#allocation4 + $0x20] sm:$0xff] %vm25_vm1, %v430_v39 }
 0x2cf   :  { %v381_v45 = vpop.xlane.xlu1 %380 }
 0x2d0   :  { %v477_v42 = vld [vmem:[#allocation4] sm:$0xff]  ;;  %v428_v3 = vsel %vm399_vm8, %v381_v45, %v421_v40  ;;  %v379_v4 = vpop.xlane.xlu0 %378 }
 0x2d1   :  { %v484_v43 = vadd.f32 %v477_v42, %v470_v41  ;;  %435 = vst.msk [vmem:[#allocation4 + $0x10] sm:$0xff] %vm25_vm1, %v428_v3  ;;  %v427_v7 = vsel %vm398_vm7, %v379_v4, %v420_v28 }
 0x2d2   :  { %434 = vst.msk [vmem:[#allocation4 + $0x8] sm:$0xff] %vm25_vm1, %v427_v7 }
 0x2d3   :  { %492 = vst.msk [vmem:[%s1138_s4] sm:$0xff] %vm25_vm1, %v484_v43 }
 0x2d4   :  { %v481_v12 = vld [vmem:[#allocation4 + $0x20] sm:$0xff]  ;;  %v389_v14 = vpop.xlane.xlu1 %388  ;;  %v383_v26 = vpop.xlane.xlu0 %382 }
 0x2d5   :  { %v488_v29 = vadd.f32 %v481_v12, %v474_v32  ;;  %v432_v30 = vsel %vm403_vm11, %v389_v14, %v425_v8  ;;  %v429_v11 = vsel %vm400_vm12, %v383_v26, %v422_v46 }
 0x2d6   :  { %439 = vst.msk [vmem:[#allocation4 + $0x30] sm:$0xff] %vm25_vm1, %v432_v30  ;;  %436 = vst.msk [vmem:[#allocation4 + $0x18] sm:$0xff] %vm25_vm1, %v429_v11 }
 0x2d7   :  { %496 = vst.msk [vmem:[%s1138_s4 + $0x20] sm:$0xff] %vm25_vm1, %v488_v29 }
 0x2d8   :  { %v479_v49 = vld [vmem:[#allocation4 + $0x10] sm:$0xff]  ;;  %v387_v27 = vpop.xlane.xlu0 %386 }
 0x2d9   :  { %v486_v19 = vadd.f32 %v479_v49, %v472_v48  ;;  %v478_v21 = vld [vmem:[#allocation4 + $0x8] sm:$0xff]  ;;  %v431_v20 = vsel %vm402_vm15, %v387_v27, %v424_v13 }
 0x2da   :  { %v485_v22 = vadd.f32 %v478_v21, %v471_v52  ;;  %438 = vst.msk [vmem:[#allocation4 + $0x28] sm:$0xff] %vm25_vm1, %v431_v20 }
 0x2db   :  { %494 = vst.msk [vmem:[%s1138_s4 + $0x10] sm:$0xff] %vm25_vm1, %v486_v19 }
 0x2dc   :  { %493 = vst.msk [vmem:[%s1138_s4 + $0x8] sm:$0xff] %vm25_vm1, %v485_v22 }
 0x2dd   :  { %v483_v31 = vld [vmem:[#allocation4 + $0x30] sm:$0xff]  ;;  %v480_v37 = vld [vmem:[#allocation4 + $0x18] sm:$0xff] }
 0x2de   :  { %v490_v54 = vadd.f32 %v483_v31, %v476_v47  ;;  %v487_v34 = vadd.f32 %v480_v37, %v473_v53 }
 0x2e0   :  { %498 = vst.msk [vmem:[%s1138_s4 + $0x30] sm:$0xff] %vm25_vm1, %v490_v54  ;;  %495 = vst.msk [vmem:[%s1138_s4 + $0x18] sm:$0xff] %vm25_vm1, %v487_v34 }
 0x2e1   :  { %v482_v55 = vld [vmem:[#allocation4 + $0x28] sm:$0xff] }
 0x2e2   :  { %v489_v38 = vadd.f32 %v482_v55, %v475_v36 }
 0x2e4   :  { %497 = vst.msk [vmem:[%s1138_s4 + $0x28] sm:$0xff] %vm25_vm1, %v489_v38 }

</bundles_post_ra>
